<compile_context>
chip_gen: v6e
topology: v6e:2x2x1
jax: 0.10.0
libtpu: 0.0.40
codegen_flags: <defaults>
</compile_context>

<pallas_src>
import functools

import jax
import jax.numpy as jnp
from jax import lax
from jax.experimental import pallas as pl
from jax.experimental.pallas import tpu as pltpu
import numpy as np


def _fspecial_gauss_1d(size, sigma):
    """Deterministic 1-D Gaussian window, identical to the PyTorch helper."""
    coords = np.arange(size, dtype=np.float32) - (size // 2)
    g = np.exp(-(coords ** 2) / (2.0 * sigma ** 2))
    return (g / g.sum()).astype(np.float32)  # shape (size,)


def _conv_matrices(H, W, g):
    """Matrices so that valid separable conv == GhT @ (A @ Gw)."""
    k = g.shape[0]
    Ho, Wo = H - k + 1, W - k + 1
    # horizontal conv: out[:, wo] = sum_j A[:, wo + j] * g[j]  ->  A @ Gw
    Gw = np.zeros((W, Wo), dtype=np.float32)
    for wo in range(Wo):
        Gw[wo:wo + k, wo] = g
    # vertical conv: out[ho, :] = sum_j A[ho + j, :] * g[j]    ->  GhT @ A
    GhT = np.zeros((Ho, H), dtype=np.float32)
    for ho in range(Ho):
        GhT[ho, ho:ho + k] = g
    return GhT, Gw


def _block_diag(m, reps):
    r, c = m.shape
    out = np.zeros((reps * r, reps * c), dtype=m.dtype)
    for i in range(reps):
        out[i * r:(i + 1) * r, i * c:(i + 1) * c] = m
    return out


def _ssim_kernel(x_ref, y_ref, gw5_ref, ghtb_ref, out_ref, *,
                 c1, c2, H, W, Ho, Wo, TB, B, need_mask):
    g = pl.program_id(0)

    # Load TB images, cast after DMA, fold batch into the sublane (M) axis.
    x = x_ref[...].astype(jnp.float32).reshape(TB * H, W)
    y = y_ref[...].astype(jnp.float32).reshape(TB * H, W)

    if need_mask:
        # Zero out rows belonging to padded (out-of-range) images so the
        # matmuls stay finite; their SSIM contribution is masked again below.
        n_img = jnp.minimum(B - g * TB, TB)
        rows_in = lax.broadcasted_iota(jnp.int32, (TB * H, 1), 0)
        in_valid = rows_in < n_img * H
        x = jnp.where(in_valid, x, 0.0)
        y = jnp.where(in_valid, y, 0.0)

    # Fuse the 5 blurs into 2 matmuls: channels packed along lanes.
    a = jnp.concatenate([x, y, x * x, y * y, x * y], axis=1)        # (TB*H, 5W)
    t = jnp.dot(a, gw5_ref[...],
                preferred_element_type=jnp.float32)                 # (TB*H, 5Wo)
    r = jnp.dot(ghtb_ref[...], t,
                preferred_element_type=jnp.float32)                 # (TB*Ho, 5Wo)

    mu1 = r[:, 0 * Wo:1 * Wo]
    mu2 = r[:, 1 * Wo:2 * Wo]
    exx = r[:, 2 * Wo:3 * Wo]
    eyy = r[:, 3 * Wo:4 * Wo]
    exy = r[:, 4 * Wo:5 * Wo]

    mu1_sq = mu1 * mu1
    mu2_sq = mu2 * mu2
    mu1_mu2 = mu1 * mu2
    sigma1_sq = exx - mu1_sq
    sigma2_sq = eyy - mu2_sq
    sigma12 = exy - mu1_mu2

    cs_map = (2.0 * sigma12 + c2) / (sigma1_sq + sigma2_sq + c2)
    cs_map = jnp.maximum(cs_map, 0.0)                 # nonnegative_ssim relu
    ssim_map = (2.0 * mu1_mu2 + c1) / (mu1_sq + mu2_sq + c1) * cs_map
    ssim_map = jnp.maximum(ssim_map, 0.0)             # nonnegative_ssim relu

    if need_mask:
        rows_out = lax.broadcasted_iota(jnp.int32, (TB * Ho, 1), 0)
        out_valid = rows_out < n_img * Ho
        ssim_map = jnp.where(out_valid, ssim_map, 0.0)

    # Per-block partial sum, written lane-dense (unmasked vst); the global
    # mean happens outside the kernel so the grid axis stays fully parallel.
    s = jnp.sum(ssim_map)
    out_ref[...] = jnp.broadcast_to(s, (1, 1, 128)).astype(jnp.float32)


def ssim_forward(X, Y, *, win_size=11, win_sigma=1.5, data_range=1.0,
                 K=(0.01, 0.03)):
    """Pallas implementation of SSIM().forward(X, Y) -> scalar mean SSIM."""
    N, C, H, W = X.shape
    assert Y.shape == X.shape
    assert win_size % 2 == 1
    assert H >= win_size and W >= win_size
    k1, k2 = K
    c1 = float((k1 * data_range) ** 2)
    c2 = float((k2 * data_range) ** 2)

    gauss = _fspecial_gauss_1d(win_size, win_sigma)
    GhT, Gw = _conv_matrices(H, W, gauss)
    Ho, Wo = H - win_size + 1, W - win_size + 1

    B = N * C

    # Images per grid step: target ~256 sublanes of matmul M work, capped so
    # 2 inputs x 2 pipeline buffers of (TB, H, W) f32 stay well inside VMEM.
    tb = max(1, 256 // H)
    tb = min(tb, B)
    max_tb_vmem = max(1, (8 * 1024 * 1024) // (2 * 2 * H * W * 4))
    TB = max(1, min(tb, max_tb_vmem))
    G = (B + TB - 1) // TB
    need_mask = (B % TB) != 0

    gw5 = jnp.asarray(_block_diag(Gw, 5))        # (5W, 5Wo)  horizontal pass
    ghtb = jnp.asarray(_block_diag(GhT, TB))     # (TB*Ho, TB*H) vertical pass

    x = X.reshape(B, H, W)
    y = Y.reshape(B, H, W)

    kernel = functools.partial(
        _ssim_kernel, c1=c1, c2=c2, H=H, W=W, Ho=Ho, Wo=Wo,
        TB=TB, B=B, need_mask=need_mask)

    partials = pl.pallas_call(
        kernel,
        out_shape=jax.ShapeDtypeStruct((G, 1, 128), jnp.float32),
        grid_spec=pltpu.PrefetchScalarGridSpec(
            num_scalar_prefetch=0,
            grid=(G,),
            in_specs=[
                pl.BlockSpec((TB, H, W), lambda g: (g, 0, 0)),        # X images
                pl.BlockSpec((TB, H, W), lambda g: (g, 0, 0)),        # Y images
                pl.BlockSpec((5 * W, 5 * Wo), lambda g: (0, 0)),      # Gw block-diag
                pl.BlockSpec((TB * Ho, TB * H), lambda g: (0, 0)),    # GhT block-diag
            ],
            out_specs=pl.BlockSpec((1, 1, 128), lambda g: (g, 0, 0)),
        ),
        compiler_params=pltpu.CompilerParams(
            dimension_semantics=("parallel",),
            vmem_limit_bytes=32 * 1024 * 1024,
        ),
    )(x, y, gw5, ghtb)

    total = float(B * Ho * Wo)
    return jnp.sum(partials[:, 0, 0]) / total


def ssim_reference(X, Y, *, win_size=11, win_sigma=1.5, data_range=1.0,
                   K=(0.01, 0.03)):
    """Plain-JAX reference (same math, no Pallas) for verification."""
    N, C, H, W = X.shape
    k1, k2 = K
    c1 = (k1 * data_range) ** 2
    c2 = (k2 * data_range) ** 2
    GhT, Gw = _conv_matrices(H, W, _fspecial_gauss_1d(win_size, win_sigma))
    GhT = jnp.asarray(GhT)
    Gw = jnp.asarray(Gw)
    x = X.reshape(N * C, H, W).astype(jnp.float32)
    y = Y.reshape(N * C, H, W).astype(jnp.float32)

    def blur(a):
        t = jnp.einsum('bhw,wv->bhv', a, Gw)       # horizontal first
        return jnp.einsum('oh,bhv->bov', GhT, t)   # then vertical

    mu1, mu2 = blur(x), blur(y)
    s1 = blur(x * x) - mu1 * mu1
    s2 = blur(y * y) - mu2 * mu2
    s12 = blur(x * y) - mu1 * mu2
    cs = jnp.maximum((2 * s12 + c2) / (s1 + s2 + c2), 0.0)
    sm = jnp.maximum((2 * mu1 * mu2 + c1) / (mu1 * mu1 + mu2 * mu2 + c1) * cs,
                     0.0)
    return sm.mean()


if __name__ == "__main__":
    key = jax.random.PRNGKey(0)
    kx, ky = jax.random.split(key)
    # channel=1 matches the SSIM module default (grouped conv requires C == 1)
    N, C, H, W = 2, 1, 16, 16
    X = jax.random.uniform(kx, (N, C, H, W), dtype=jnp.float32)
    Y = jax.random.uniform(ky, (N, C, H, W), dtype=jnp.float32)

    out = jax.block_until_ready(ssim_forward(X, Y))

    ref = ssim_reference(X, Y)
    np.testing.assert_allclose(np.asarray(out), np.asarray(ref),
                               rtol=1e-5, atol=1e-5)
    print("KERNEL_OK")
</pallas_src>

<mosaic_0001>
module attributes {stable_mosaic.version = 11 : i64} {
  func.func @_ssim_kernel(%arg0: i32, %arg1: memref<2x16x16xf32, #tpu.memory_space<vmem>>, %arg2: memref<2x16x16xf32, #tpu.memory_space<vmem>>, %arg3: memref<80x30xf32, #tpu.memory_space<vmem>>, %arg4: memref<12x32xf32, #tpu.memory_space<vmem>>, %arg5: memref<1x1x128xf32, #tpu.memory_space<vmem>>) attributes {dimension_semantics = [#tpu.dimension_semantics<parallel>], iteration_bounds = array<i64: 1>, scalar_prefetch = 0 : i64, scratch_operands = 0 : i64, tpu.core_type = #tpu.core_type<tc>, window_params = [{transform_indices = @transform_0, window_bounds = array<i64: 2, 16, 16>}, {transform_indices = @transform_1, window_bounds = array<i64: 2, 16, 16>}, {pipeline_mode = #tpu.pipeline_mode<synchronous>, transform_indices = @transform_2, window_bounds = array<i64: 80, 30>}, {pipeline_mode = #tpu.pipeline_mode<synchronous>, transform_indices = @transform_3, window_bounds = array<i64: 12, 32>}, {transform_indices = @transform_4, window_bounds = array<i64: 1, 1, 128>}]} {
    %c0 = arith.constant 0 : index
    %c0_0 = arith.constant 0 : index
    %c0_1 = arith.constant 0 : index
    %0 = vector.load %arg1[%c0, %c0_0, %c0_1] : memref<2x16x16xf32, #tpu.memory_space<vmem>>, vector<2x16x16xf32>
    %1 = vector.shape_cast %0 : vector<2x16x16xf32> to vector<32x16xf32>
    %c0_2 = arith.constant 0 : index
    %c0_3 = arith.constant 0 : index
    %c0_4 = arith.constant 0 : index
    %2 = vector.load %arg2[%c0_2, %c0_3, %c0_4] : memref<2x16x16xf32, #tpu.memory_space<vmem>>, vector<2x16x16xf32>
    %3 = vector.shape_cast %2 : vector<2x16x16xf32> to vector<32x16xf32>
    %4 = arith.mulf %1, %1 : vector<32x16xf32>
    %5 = arith.mulf %3, %3 : vector<32x16xf32>
    %6 = arith.mulf %1, %3 : vector<32x16xf32>
    %7 = tpu.concatenate %1, %3, %4, %5, %6 in 1 : vector<32x16xf32>, vector<32x16xf32>, vector<32x16xf32>, vector<32x16xf32>, vector<32x16xf32> -> vector<32x80xf32>
    %c0_5 = arith.constant 0 : index
    %c0_6 = arith.constant 0 : index
    %8 = vector.load %arg3[%c0_5, %c0_6] : memref<80x30xf32, #tpu.memory_space<vmem>>, vector<80x30xf32>
    %cst = arith.constant dense<0.000000e+00> : vector<32x30xf32>
    %9 = tpu.matmul %7, %8, %cst {dimension_numbers = #tpu.dot_dimension_numbers<[1], [0], [0], [1], [0, 0, 1, 1], [], []>} : vector<32x80xf32>, vector<80x30xf32>, vector<32x30xf32> -> vector<32x30xf32>
    %c0_7 = arith.constant 0 : index
    %c0_8 = arith.constant 0 : index
    %10 = vector.load %arg4[%c0_7, %c0_8] : memref<12x32xf32, #tpu.memory_space<vmem>>, vector<12x32xf32>
    %cst_9 = arith.constant dense<0.000000e+00> : vector<12x30xf32>
    %11 = tpu.matmul %10, %9, %cst_9 {dimension_numbers = #tpu.dot_dimension_numbers<[1], [0], [0], [1], [0, 0, 1, 1], [], []>} : vector<12x32xf32>, vector<32x30xf32>, vector<12x30xf32> -> vector<12x30xf32>
    %12 = vector.extract_strided_slice %11 {offsets = [0, 0], sizes = [12, 6], strides = [1, 1]} : vector<12x30xf32> to vector<12x6xf32>
    %13 = vector.extract_strided_slice %11 {offsets = [0, 6], sizes = [12, 6], strides = [1, 1]} : vector<12x30xf32> to vector<12x6xf32>
    %14 = vector.extract_strided_slice %11 {offsets = [0, 12], sizes = [12, 6], strides = [1, 1]} : vector<12x30xf32> to vector<12x6xf32>
    %15 = vector.extract_strided_slice %11 {offsets = [0, 18], sizes = [12, 6], strides = [1, 1]} : vector<12x30xf32> to vector<12x6xf32>
    %16 = vector.extract_strided_slice %11 {offsets = [0, 24], sizes = [12, 6], strides = [1, 1]} : vector<12x30xf32> to vector<12x6xf32>
    %17 = arith.mulf %12, %12 : vector<12x6xf32>
    %18 = arith.mulf %13, %13 : vector<12x6xf32>
    %19 = arith.mulf %12, %13 : vector<12x6xf32>
    %20 = arith.subf %14, %17 : vector<12x6xf32>
    %21 = arith.subf %15, %18 : vector<12x6xf32>
    %22 = arith.subf %16, %19 : vector<12x6xf32>
    %cst_10 = arith.constant 2.000000e+00 : f32
    %23 = vector.broadcast %cst_10 : f32 to vector<12x6xf32>
    %24 = arith.mulf %23, %22 : vector<12x6xf32>
    %cst_11 = arith.constant 8.99999984E-4 : f32
    %25 = vector.broadcast %cst_11 : f32 to vector<12x6xf32>
    %26 = arith.addf %24, %25 : vector<12x6xf32>
    %27 = arith.addf %20, %21 : vector<12x6xf32>
    %cst_12 = arith.constant 8.99999984E-4 : f32
    %28 = vector.broadcast %cst_12 : f32 to vector<12x6xf32>
    %29 = arith.addf %27, %28 : vector<12x6xf32>
    %30 = arith.divf %26, %29 : vector<12x6xf32>
    %cst_13 = arith.constant 0.000000e+00 : f32
    %31 = vector.broadcast %cst_13 : f32 to vector<12x6xf32>
    %32 = arith.maximumf %30, %31 : vector<12x6xf32>
    %cst_14 = arith.constant 2.000000e+00 : f32
    %33 = vector.broadcast %cst_14 : f32 to vector<12x6xf32>
    %34 = arith.mulf %33, %19 : vector<12x6xf32>
    %cst_15 = arith.constant 9.99999974E-5 : f32
    %35 = vector.broadcast %cst_15 : f32 to vector<12x6xf32>
    %36 = arith.addf %34, %35 : vector<12x6xf32>
    %37 = arith.addf %17, %18 : vector<12x6xf32>
    %cst_16 = arith.constant 9.99999974E-5 : f32
    %38 = vector.broadcast %cst_16 : f32 to vector<12x6xf32>
    %39 = arith.addf %37, %38 : vector<12x6xf32>
    %40 = arith.divf %36, %39 : vector<12x6xf32>
    %41 = arith.mulf %40, %32 : vector<12x6xf32>
    %cst_17 = arith.constant 0.000000e+00 : f32
    %42 = vector.broadcast %cst_17 : f32 to vector<12x6xf32>
    %43 = arith.maximumf %41, %42 : vector<12x6xf32>
    %44 = vector.shape_cast %43 : vector<12x6xf32> to vector<1x12x6xf32>
    %cst_18 = arith.constant dense<0.000000e+00> : vector<1xf32>
    %45 = vector.multi_reduction <add>, %44, %cst_18 [1, 2] : vector<1x12x6xf32> to vector<1xf32>
    %46 = vector.shape_cast %45 : vector<1xf32> to vector<1x1x1xf32>
    %47 = vector.extract %46[0, 0, 0] : f32 from vector<1x1x1xf32>
    %48 = vector.broadcast %47 : f32 to vector<1x1x128xf32>
    %c0_19 = arith.constant 0 : index
    %c0_20 = arith.constant 0 : index
    %c0_21 = arith.constant 0 : index
    %49 = vector.load %arg5[%c0_19, %c0_20, %c0_21] : memref<1x1x128xf32, #tpu.memory_space<vmem>>, vector<1x1x128xf32>
    tpu.vector_store %arg5[%c0_19, %c0_20, %c0_21], %48 {strides = array<i32>} : memref<1x1x128xf32, #tpu.memory_space<vmem>>, vector<1x1x128xf32>,
    return
  }
  func.func @transform_0(%arg0: i32) -> (i32, i32, i32) {
    %c0_i32 = arith.constant 0 : i32
    %c0_i32_0 = arith.constant 0 : i32
    %c0_i32_1 = arith.constant 0 : i32
    return %arg0, %c0_i32, %c0_i32_0 : i32, i32, i32
  }
  func.func @transform_1(%arg0: i32) -> (i32, i32, i32) {
    %c0_i32 = arith.constant 0 : i32
    %c0_i32_0 = arith.constant 0 : i32
    %c0_i32_1 = arith.constant 0 : i32
    return %arg0, %c0_i32, %c0_i32_0 : i32, i32, i32
  }
  func.func @transform_2(%arg0: i32) -> (i32, i32) {
    %c0_i32 = arith.constant 0 : i32
    %c0_i32_0 = arith.constant 0 : i32
    %c0_i32_1 = arith.constant 0 : i32
    return %c0_i32, %c0_i32_0 : i32, i32
  }
  func.func @transform_3(%arg0: i32) -> (i32, i32) {
    %c0_i32 = arith.constant 0 : i32
    %c0_i32_0 = arith.constant 0 : i32
    %c0_i32_1 = arith.constant 0 : i32
    return %c0_i32, %c0_i32_0 : i32, i32
  }
  func.func @transform_4(%arg0: i32) -> (i32, i32, i32) {
    %c0_i32 = arith.constant 0 : i32
    %c0_i32_0 = arith.constant 0 : i32
    %c0_i32_1 = arith.constant 0 : i32
    return %arg0, %c0_i32, %c0_i32_0 : i32, i32, i32
  }
}

</mosaic_0001>

<bundles_post_ra>
// kernel: tpu_custom_call.1
= control target key start
LH: loop header
LB: loop body
LE: loop exit
PB: predicated region body
PF: predicated region fallthrough
CT: control target
= control target key end

     0   :  { %s539_s19 = smov 16   ;;  %s540_s26 = smov 32   ;;  %s686_s0 = inlined_call_operand.vmem [shape: f32[2,16,16], index: 0, kind: input, shape index: {}]   ;;  %s687_s1 = inlined_call_operand.vmem [shape: f32[2,16,16], index: 1, kind: input, shape index: {}]   ;;  %s688_s2 = inlined_call_operand.vmem [shape: f32[80,30], index: 2, kind: input, shape index: {}]   ;;  %s689_s3 = inlined_call_operand.vmem [shape: f32[12,32], index: 3, kind: input, shape index: {}]   ;;  %s690_s4 = inlined_call_operand.hbm [shape: f32[1,1,128], index: 4, kind: output, shape index: {}]  }
   0x1   :  { %v22_v0 = vld [vmem:[%s687_s1] sm:$0xff]  ;;  %v587_v3 = vld [vmem:[%s686_s0 + $0x8] sm:$0xff]  ;;  %v129_v9 = vld [vmem:[%s688_s2 + $0x38] sm:$0xff] }
   0x2   :  { %v579_v1 = vld [vmem:[%s686_s0] sm:$0xff]  ;;  %42 = vrot.lane.b32.xlu0 %v22_v0, %s539_s19  ;;  %v23_v4 = vld [vmem:[%s687_s1 + $0x8] sm:$0xff]  ;;  %v27_v6 = vmul.f32 %v587_v3, %v587_v3  ;;  %v30_v8 = vmul.f32 %v22_v0, %v22_v0 }
   0x3   :  { %v26_v2 = vmul.f32 %v579_v1, %v579_v1  ;;  %v131_v5 = vld [vmem:[%s688_s2 + $0x48] sm:$0xff]  ;;  %v130_v7 = vld [vmem:[%s688_s2 + $0x40] sm:$0xff] }
   0x4   :  { %461 = vmatprep.subr.mxu0 %v131_v5 }
   0x5   :  { %58 = vrot.lane.b32.xlu1 %v26_v2, %s540_s26  ;;  %462 = vmatpush3.msra.mxu0 %v131_v5 }
   0x6   :  { %44 = vrot.lane.b32.xlu0 %v23_v4, %s539_s19  ;;  %463 = vmatprep.subr.mxu0 %v130_v7 }
   0x7   :  { %9 = vsyncpa [#allocation3], 0  ;;  %v31_v10 = vmul.f32 %v23_v4, %v23_v4  ;;  %464 = vmatpush3.msra.mxu0 %v130_v7  ;;  %v128_v11 = vld [vmem:[%s688_s2 + $0x30] sm:$0xff]  ;;  %s541_s7 = smov 48   ;;  %v34_v12 = vmul.f32 %v22_v0, %v579_v1  ;;  %v127_v13 = vld [vmem:[%s688_s2 + $0x28] sm:$0xff]  ;;  %s542_s14 = smov 64   ;;  %v35_v16 = vmul.f32 %v23_v4, %v587_v3 }
   0x8   :  { %465 = vmatprep.subr.mxu0 %v129_v9  ;;  %v126_v14 = vld [vmem:[%s688_s2 + $0x20] sm:$0xff]  ;;  %v24_v15 = vld [vmem:[%s687_s1 + $0x10] sm:$0xff]  ;;  %v125_v17 = vld [vmem:[%s688_s2 + $0x18] sm:$0xff]  ;;  %vm102_vm0 = vcmask 130048   ;;  %vm107_vm1 = vcmask 261120   ;;  %vm112_vm2 = vcmask 392192  }
   0x9   :  { %60 = vrot.lane.b32.xlu1 %v27_v6, %s540_s26  ;;  %466 = vmatpush3.msra.mxu0 %v129_v9  ;;  %v20_v18 = vld [vmem:[%s686_s0 + $0x10] sm:$0xff]  ;;  %v25_v20 = vld [vmem:[%s687_s1 + $0x18] sm:$0xff]  ;;  %v123_v23 = vld [vmem:[%s688_s2 + $0x8] sm:$0xff]  ;;  %v32_v26 = vmul.f32 %v24_v15, %v24_v15  ;;  %vm117_vm3 = vcmask 523264   ;;  %vm132_vm4 = vcmask 654336   ;;  %s543_s30 = smov 12  }
   0xa   :  { %74 = vrot.lane.b32.xlu0 %v30_v8, %s541_s7  ;;  %467 = vmatprep.subr.mxu0 %v128_v11  ;;  %v124_v19 = vld [vmem:[%s688_s2 + $0x10] sm:$0xff]  ;;  %v21_v21 = vld [vmem:[%s686_s0 + $0x18] sm:$0xff]  ;;  %v28_v22 = vmul.f32 %v20_v18, %v20_v18  ;;  %v122_v25 = vld [vmem:[%s688_s2] sm:$0xff]  ;;  %v33_v27 = vmul.f32 %v25_v20, %v25_v20  ;;  %v36_v28 = vmul.f32 %v24_v15, %v20_v18  ;;  %s544_s5 = smov 122   ;;  %s546_s6 = smov 104   ;;  %vm405_vm5 = vcmask 48128  }
   0xb   :  { %468 = vmatpush3.msra.mxu0 %v128_v11  ;;  %v29_v24 = vmul.f32 %v21_v21, %v21_v21  ;;  %v37_v29 = vmul.f32 %v25_v20, %v21_v21  ;;  %v230_v62 = vld [vmem:[%s689_s3] sm:$0xff]  ;;  %vm407_vm6 = vcmask 44032  }
   0xc   :  { %469 = vmatprep.subr.mxu0 %v127_v13  ;;  %495 = vmatprep.mubr.msk.f32.mxu1 %vm107_vm1, %v230_v62 }
   0xd   :  { %76 = vrot.lane.b32.xlu1 %v31_v10, %s541_s7  ;;  %470 = vmatpush3.msra.mxu0 %v127_v13 }
   0xe   :  { %90 = vrot.lane.b32.xlu0 %v34_v12, %s542_s14  ;;  %471 = vmatprep.subr.mxu0 %v126_v14 }
   0xf   :  { %472 = vmatpush3.msra.mxu0 %v126_v14 }
  0x10   :  { %473 = vmatprep.subr.mxu0 %v125_v17 }
  0x11   :  { %46 = vrot.lane.b32.xlu1 %v24_v15, %s539_s19  ;;  %474 = vmatpush3.msra.mxu0 %v125_v17 }
  0x12   :  { %92 = vrot.lane.b32.xlu0 %v35_v16, %s542_s14  ;;  %475 = vmatprep.subr.mxu0 %v124_v19 }
  0x13   :  { %476 = vmatpush3.msra.mxu0 %v124_v19 }
  0x14   :  { %477 = vmatprep.subr.mxu0 %v123_v23 }
  0x15   :  { %48 = vrot.lane.b32.xlu1 %v25_v20, %s539_s19  ;;  %478 = vmatpush3.msra.mxu0 %v123_v23 }
  0x16   :  { %62 = vrot.lane.b32.xlu0 %v28_v22, %s540_s26  ;;  %479 = vmatprep.subr.mxu0 %v122_v25 }
  0x17   :  { %480 = vmatpush3.msra.mxu0 %v122_v25 }
  0x19   :  { %64 = vrot.lane.b32.xlu1 %v29_v24, %s540_s26 }
  0x1a   :  { %78 = vrot.lane.b32.xlu0 %v32_v26, %s541_s7 }
  0x1d   :  { %80 = vrot.lane.b32.xlu1 %v33_v27, %s541_s7  ;;  %s547_s7 = smov [#allocation2]  }
  0x1e   :  { %94 = vrot.lane.b32.xlu0 %v36_v28, %s542_s14  ;;  %s427_s8 = sshll.u32 %s547_s7, 4  ;;  %s428_s8 = int_to_ptr.vmem [resolvable:$true] %s427_s8 }
  0x1f   :  { %s517_s10 = scalar_lea.vmem %s428_s8, 16  ;;  %s521_s11 = scalar_lea.vmem %s428_s8, 32 }
  0x20   :  { %p518_p0 = scmp.ne.s32.totalorder %s428_s8, %s517_s10  ;;  %p522_p1 = scmp.lt.s32.totalorder %s428_s8, %s428_s8 }
  0x21   :  { %96 = vrot.lane.b32.xlu1 %v37_v29, %s542_s14  ;;  %p523_p2 = scmp.lt.s32.totalorder %s521_s11, %s517_s10 }
  0x23   :  { %p524_p3 = por %p523_p2, %p522_p1 }
  0x25   :  { %p525_p4 = pnand %p524_p3, %p518_p0 }
  0x74   :  { %v43_v30 = vpop.permute.xlu0 %42 }
  0x75   :  { %v103_v34 = vsel %vm102_vm0, %v579_v1, %v43_v30 }
  0x77   :  { %v59_v31 = vpop.permute.xlu1 %58 }
  0x78   :  { %v45_v32 = vpop.permute.xlu0 %44  ;;  %v108_v37 = vsel %vm107_vm1, %v103_v34, %v59_v31 }
  0x79   :  { %v104_v38 = vsel %vm102_vm0, %v587_v3, %v45_v32  ;;  %v231_v3 = vld [vmem:[%s689_s3 + $0x8] sm:$0xf]  ;;  %s545_s3 = smov 24  }
  0x7b   :  { %v61_v33 = vpop.permute.xlu1 %60 }
  0x7c   :  { %v75_v35 = vpop.permute.xlu0 %74  ;;  %v109_v43 = vsel %vm107_vm1, %v104_v38, %v61_v33 }
  0x7d   :  { %v113_v39 = vsel %vm112_vm2, %v108_v37, %v75_v35 }
  0x7f   :  { %v77_v36 = vpop.permute.xlu1 %76 }
  0x80   :  { %v91_v40 = vpop.permute.xlu0 %90  ;;  %v114_v44 = vsel %vm112_vm2, %v109_v43, %v77_v36 }
  0x81   :  { %v118_v41 = vsel %vm117_vm3, %v113_v39, %v91_v40 }
  0x82   :  { %481 = vmatprep.mubr.msk.f32.mxu0 %vm132_vm4, %v118_v41 }
  0x83   :  { %v47_v42 = vpop.permute.xlu1 %46 }
  0x84   :  { %v93_v45 = vpop.permute.xlu0 %92  ;;  %v105_v51 = vsel %vm102_vm0, %v20_v18, %v47_v42 }
  0x85   :  { %v119_v46 = vsel %vm117_vm3, %v114_v44, %v93_v45 }
  0x86   :  { %482 = vmatmul.mubr.msk.f32.vlgmr.msra.gmra.mxu0 %vm132_vm4, %v119_v46 }
  0x87   :  { %v49_v47 = vpop.permute.xlu1 %48 }
  0x88   :  { %v63_v48 = vpop.permute.xlu0 %62  ;;  %v106_v54 = vsel %vm102_vm0, %v21_v21, %v49_v47 }
  0x89   :  { %v110_v53 = vsel %vm107_vm1, %v105_v51, %v63_v48 }
  0x8b   :  { %v65_v49 = vpop.permute.xlu1 %64 }
  0x8c   :  { %v79_v50 = vpop.permute.xlu0 %78  ;;  %v111_v57 = vsel %vm107_vm1, %v106_v54, %v65_v49 }
  0x8d   :  { %v115_v55 = vsel %vm112_vm2, %v110_v53, %v79_v50 }
  0x8f   :  { %v81_v52 = vpop.permute.xlu1 %80 }
  0x90   :  { %v95_v56 = vpop.permute.xlu0 %94  ;;  %v116_v59 = vsel %vm112_vm2, %v111_v57, %v81_v52 }
  0x91   :  { %v120_v58 = vsel %vm117_vm3, %v115_v55, %v95_v56 }
  0x92   :  { %484 = vmatprep.mubr.msk.f32.mxu0 %vm132_vm4, %v120_v58 }
  0x93   :  { %v97_v60 = vpop.permute.xlu1 %96 }
  0x94   :  { %v121_v61 = vsel %vm117_vm3, %v116_v59, %v97_v60 }
  0x95   :  { %485 = vmatmul.mubr.msk.f32.gmra.mxu0 %vm132_vm4, %v121_v61 }
 0x146   :  { %v483_v63 = vpop.f32.mrf.mxu0 }
 0x148   :  { %v211_v0 = vpop.f32.mrf.mxu0 }
 0x155   :  { %v486_v1 = vpop.f32.mrf.mxu0 }
 0x156   :  { %487 = vmatprep.subr.mxu1 %v486_v1 }
 0x157   :  { %v221_v2 = vpop.f32.mrf.mxu0  ;;  %488 = vmatpush3.msra.mxu1 %v486_v1 }
 0x158   :  { %489 = vmatprep.subr.mxu1 %v221_v2 }
 0x159   :  { %490 = vmatpush3.msra.mxu1 %v221_v2 }
 0x15a   :  { %491 = vmatprep.subr.mxu1 %v483_v63 }
 0x15b   :  { %492 = vmatpush3.msra.mxu1 %v483_v63 }
 0x15c   :  { %493 = vmatprep.subr.mxu1 %v211_v0 }
 0x15d   :  { %494 = vmatpush3.msra.mxu1 %v211_v0 }
 0x15e   :  { %496 = vmatmul.mubr.msk.f32.vlgmr.msra.gmra.mxu1 %vm107_vm1, %v231_v3 }
 0x21e   :  { %v497_v4 = vpop.f32.mrf.mxu1 }
 0x21f   :  { %v314_v5 = vmul.f32 %v497_v4, %v497_v4 }
 0x220   :  { %v304_v6 = vpop.f32.mrf.mxu1 }
 0x221   :  { %329 = vrot.lane.b32.xlu1 %v314_v5, %s543_s30  ;;  %v313_v7 = vmul.f32 %v304_v6, %v304_v6 }
 0x223   :  { %327 = vrot.lane.b32.xlu0 %v313_v7, %s543_s30 }
 0x293   :  { %v330_v8 = vpop.permute.xlu1 %329 }
 0x294   :  { %v334_v9 = vsub.f32 %v497_v4, %v330_v8 }
 0x295   :  { %v328_v10 = vpop.permute.xlu0 %327 }
 0x296   :  { %v333_v11 = vsub.f32 %v304_v6, %v328_v10  ;;  %353 = vrot.lane.b32.xlu1 %v334_v9, %s544_s5 }
 0x298   :  { %351 = vrot.lane.b32.xlu0 %v333_v11, %s544_s5 }
 0x29a   :  { %319 = vrot.lane.b32.xlu1 %v497_v4, %s544_s5 }
 0x29c   :  { %317 = vrot.lane.b32.xlu0 %v304_v6, %s544_s5 }
 0x308   :  { %v354_v12 = vpop.permute.xlu1 %353 }
 0x309   :  { %v358_v13 = vadd.f32 %v354_v12, %v334_v9 }
 0x30a   :  { %v352_v14 = vpop.permute.xlu0 %351 }
 0x30b   :  { %v360_v15 = vadd.f32 0.0009, %v358_v13  ;;  %v357_v16 = vadd.f32 %v352_v14, %v333_v11 }
 0x30c   :  { %v320_v17 = vpop.permute.xlu1 %319 }
 0x30d   :  { %v359_v18 = vadd.f32 0.0009, %v357_v16  ;;  %365 = vrot.lane.b32.xlu1 %v360_v15, %s543_s30  ;;  %v324_v20 = vmul.f32 %v497_v4, %v320_v17 }
 0x30e   :  { %v318_v19 = vpop.permute.xlu0 %317 }
 0x30f   :  { %363 = vrot.lane.b32.xlu0 %v359_v18, %s543_s30  ;;  %v323_v21 = vmul.f32 %v318_v19, %v304_v6  ;;  %v376_v44 = vmul.f32 2.0, %v324_v20 }
 0x311   :  { %339 = vrot.lane.b32.xlu1 %v324_v20, %s545_s3  ;;  %v375_v45 = vmul.f32 2.0, %v323_v21  ;;  %v378_v47 = vadd.f32 0.0001, %v376_v44 }
 0x313   :  { %337 = vrot.lane.b32.xlu0 %v323_v21, %s545_s3  ;;  %v377_v49 = vadd.f32 0.0001, %v375_v45 }
 0x315   :  { %381 = vrot.lane.b32.xlu1 %v314_v5, %s544_s5 }
 0x317   :  { %379 = vrot.lane.b32.xlu0 %v313_v7, %s544_s5 }
 0x37f   :  { %v366_v22 = vpop.permute.xlu1 %365 }
 0x380   :  { %509 = vrcp.f32 %v366_v22 }
 0x381   :  { %v364_v23 = vpop.permute.xlu0 %363 }
 0x382   :  { %511 = vrcp.f32 %v364_v23 }
 0x383   :  { %v340_v24 = vpop.permute.xlu1 %339 }
 0x384   :  { %v344_v25 = vsub.f32 %v497_v4, %v340_v24 }
 0x385   :  { %v338_v26 = vpop.permute.xlu0 %337 }
 0x386   :  { %v343_v27 = vsub.f32 %v304_v6, %v338_v26  ;;  %v346_v28 = vmul.f32 2.0, %v344_v25 }
 0x387   :  { %v382_v38 = vpop.permute.xlu1 %381 }
 0x388   :  { %v345_v29 = vmul.f32 2.0, %v343_v27  ;;  %v348_v30 = vadd.f32 0.0009, %v346_v28  ;;  %v386_v40 = vadd.f32 %v382_v38, %v314_v5 }
 0x389   :  { %v380_v39 = vpop.permute.xlu0 %379 }
 0x38a   :  { %v347_v33 = vadd.f32 0.0009, %v345_v29  ;;  %v385_v41 = vadd.f32 %v380_v39, %v313_v7  ;;  %v388_v42 = vadd.f32 0.0001, %v386_v40 }
 0x38c   :  { %v387_v43 = vadd.f32 0.0001, %v385_v41  ;;  %513 = vrcp.f32 %v388_v42 }
 0x38d   :  { %v510_v31 = vpop.eup %509 }
 0x38e   :  { %v372_v32 = vmul.f32 %v510_v31, %v348_v30  ;;  %515 = vrcp.f32 %v387_v43 }
 0x38f   :  { %v512_v34 = vpop.eup %511 }
 0x390   :  { %v370_v35 = vmul.f32 %v512_v34, %v347_v33  ;;  %v374_v36 = vmax.f32 %v372_v32, 0.0 }
 0x392   :  { %397 = vrot.lane.b32.xlu1 %v374_v36, %s546_s6  ;;  %v373_v37 = vmax.f32 %v370_v35, 0.0 }
 0x394   :  { %395 = vrot.lane.b32.xlu0 %v373_v37, %s546_s6 }
 0x399   :  { %v514_v46 = vpop.eup %513 }
 0x39a   :  { %v392_v50 = vmul.f32 %v514_v46, %v378_v47 }
 0x39b   :  { %v516_v48 = vpop.eup %515 }
 0x39c   :  { %v390_v53 = vmul.f32 %v516_v48, %v377_v49 }
 0x404   :  { %v398_v51 = vpop.permute.xlu1 %397 }
 0x405   :  { %v402_v52 = vmul.f32 %v398_v51, %v392_v50 }
 0x406   :  { %v396_v54 = vpop.permute.xlu0 %395 }
 0x407   :  { %v404_v55 = vmax.f32 %v402_v52, 0.0  ;;  %v401_v56 = vmul.f32 %v396_v54, %v390_v53 }
 0x409   :  { %v403_v57 = vmax.f32 %v401_v56, 0.0  ;;  %v408_v59 = vsel %vm407_vm6, %v404_v55, 0.0 }
 0x40b   :  { %v406_v58 = vsel %vm405_vm5, %v403_v57, 0.0 }
 0x40c   :  { %v409_v60 = vadd.f32 %v408_v59, %v406_v58 }
 0x40e   :  { %410 = vadd.xlane.f32.xlu0 %v409_v60 }
 0x497   :  { %v411_v61 = vpop.xlane.xlu0 %410 }
 0x498   :  { %v412_v62 = vrot.slane %v411_v61, 4 }
 0x49a   :  { %v413_v63 = vadd.f32 %v412_v62, %v411_v61 }
 0x49c   :  { %v414_v0 = vrot.slane %v413_v63, 2 }
 0x49e   :  { %v415_v1 = vadd.f32 %v414_v0, %v413_v63 }
 0x4a0   :  { %v416_v2 = vrot.slane %v415_v1, 1 }
 0x4a2   :  { %v417_v3 = vadd.f32 %v416_v2, %v415_v1 }
 0x4a4   :  { %498 = vpush %v417_v3 }
 0x4d5   :  { %s499_s9 = spop %498 }
 0x4d6   :  { %v419_v4 = vstv %s499_s9 }
 0x4d7   :  { %420 = vst [vmem:[#allocation2] sm:$0x1] %v419_v4 }
 0x4d8   :  { %528 = shalt.err (!%p525_p4)
}
 0x4d9   :  { %430 = dma.vmem_to_hbm [thread:$0]  %s428_s8, 16, %s690_s4, [#allocation3]  }
 0x4da   :  { %537 = dma.done.wait [#allocation3], 16  }
 0x4db   :  { %538 = vsyncadd [#allocation3], 4294967280 }
 0x4dc   :  { %434 = vsyncpa [#allocation3], 1 }

</bundles_post_ra>
